<compile_context>
chip_gen: v6e
topology: v6e:2x2x1
jax: 0.10.0
libtpu: 0.0.40
codegen_flags: <defaults>
</compile_context>

<pallas_src>
import jax
import jax.numpy as jnp
from jax.experimental import pallas as pl
from jax.experimental.pallas import tpu as pltpu


def _round_up(n, m):
    return ((n + m - 1) // m) * m


def _vmem_footprint_bytes(tb, d_in, d_out_p, out_w):
    """Approximate f32 VMEM footprint of one grid step.

    Double-buffered streamed x and output tiles + single-resident weight/bias.
    """
    return 4 * (2 * tb * d_in + d_in * d_out_p + d_out_p + 2 * tb * out_w)


def _make_kernel(mxu_dtype):
    def _linear_kernel(x_ref, w_ref, b_ref, o_ref):
        # x_ref: [TB, D_in], w_ref: [D_in, D_out_p], b_ref: [1, D_out_p],
        # o_ref: [TB, out_w] with out_w == D_out (unpadded) or D_out_p (padded).
        x = x_ref[...]
        w = w_ref[...]
        if mxu_dtype is not None:
            # Opt-in bf16 MXU feed (v6e/v7x native); accumulation stays f32.
            x = x.astype(mxu_dtype)
            w = w.astype(mxu_dtype)
        acc = jnp.dot(x, w, preferred_element_type=jnp.float32)
        acc = acc + b_ref[...]
        o_ref[...] = acc[:, : o_ref.shape[-1]].astype(o_ref.dtype)

    return _linear_kernel


def prepare_params(weight, bias, dtype=jnp.float32):
    """One-time parameter layout prep (hoisted out of the per-call path).

    Args:
      weight: [D_out, D_in]  (PyTorch nn.Linear convention)
      bias:   [D_out]
    Returns:
      w_t: [D_in, D_out_p]  transposed weight, class dim zero-padded to a
           multiple of 128 lanes for the MXU feed.
      b2d: [1, D_out_p]     bias, zero-padded to match.
    """
    d_out, d_in = weight.shape
    d_out_p = _round_up(max(d_out, 128), 128)
    w_t = jnp.zeros((d_in, d_out_p), dtype).at[:, :d_out].set(weight.T.astype(dtype))
    b2d = jnp.zeros((1, d_out_p), dtype).at[:, :d_out].set(bias.astype(dtype))
    return w_t, b2d


def linear_forward(x, w_t, b2d, d_out, *, block_b=4096, pad_output=False,
                   mxu_dtype=None, vmem_budget_bytes=12 * 1024 * 1024):
    """scores = x @ W^T + b, tiled over the batch axis.

    Args:
      x:     [B, D_in] float32
      w_t:   [D_in, D_out_p]  from prepare_params
      b2d:   [1, D_out_p]     from prepare_params
      d_out: true (unpadded) number of classes
    Returns:
      scores: [B, d_out] float32 (raw linear scores, matching the module).
    """
    B, D_in = x.shape
    D_out_p = w_t.shape[1]
    out_w = D_out_p if pad_output else d_out

    # --- batch tile selection -------------------------------------------------
    # Large tiles amortize the ~0.35us per-grid-step overhead and keep output
    # DMAs large; the footprint formula keeps us under v5e's 16 MiB default
    # scoped VMEM (the smallest default of v5e/v6e/v7x).
    TB = min(_round_up(block_b, 8), _round_up(B, 8))
    # v7x megacore: keep >= 2 grid steps so both TensorCores get work.
    if B >= 16:
        TB = min(TB, _round_up(-(-B // 2), 8))
    while TB > 8 and _vmem_footprint_bytes(TB, D_in, D_out_p, out_w) > vmem_budget_bytes:
        TB = max(8, _round_up(TB // 2, 8))

    footprint = _vmem_footprint_bytes(TB, D_in, D_out_p, out_w)
    # Only raise the scoped-VMEM limit when the (weight-dominated) footprint
    # cannot fit the conservative budget even at the smallest batch tile.
    vmem_limit = int(footprint * 1.25) if footprint > vmem_budget_bytes else None
    # TODO(synk): for very large D_in (resident [D_in, D_out_p] f32 weight near
    # the VMEM budget, esp. v7x's 64 MiB), add a K-tiling grid axis with a VMEM
    # f32 accumulator scratch (pl.when init/finalize) instead of a fully
    # resident weight.

    grid = (pl.cdiv(B, TB),)  # ragged last block handled by Pallas; no x padding

    out = pl.pallas_call(
        _make_kernel(mxu_dtype),
        out_shape=jax.ShapeDtypeStruct((B, out_w), jnp.float32),
        grid=grid,
        in_specs=[
            pl.BlockSpec((TB, D_in), lambda i: (i, 0)),        # streamed x tiles
            pl.BlockSpec((D_in, D_out_p), lambda i: (0, 0)),   # resident weight
            pl.BlockSpec((1, D_out_p), lambda i: (0, 0)),      # resident bias
        ],
        out_specs=pl.BlockSpec((TB, out_w), lambda i: (i, 0)),
        compiler_params=pltpu.CompilerParams(
            dimension_semantics=("parallel",),
            vmem_limit_bytes=vmem_limit),
    )(x, w_t, b2d)

    return out if out_w == d_out else out[:, :d_out]


def make_logistic_regression_forward(weight, bias, **kwargs):
    """Prepare parameters once and return a jitted forward(x) -> scores."""
    w_t, b2d = prepare_params(weight, bias)
    d_out = weight.shape[0]

    @jax.jit
    def forward(x):
        return linear_forward(x, w_t, b2d, d_out, **kwargs)

    return forward


if __name__ == "__main__":
    # Small shapes consistent with the module: input_dim=32, output_dim=8.
    D_in, D_out = 32, 8
    key = jax.random.PRNGKey(0)
    kx1, kx2, kw, kb = jax.random.split(key, 4)

    # Deterministic params mimicking nn.Linear's uniform(-1/sqrt(fan_in), ...).
    bound = 1.0 / jnp.sqrt(jnp.float32(D_in))
    weight = jax.random.uniform(kw, (D_out, D_in), jnp.float32, -bound, bound)
    bias = jax.random.uniform(kb, (D_out,), jnp.float32, -bound, bound)

    forward = make_logistic_regression_forward(weight, bias)

    # Case 1: small aligned batch.
    x1 = jax.random.normal(kx1, (8, D_in), dtype=jnp.float32)
    s1 = forward(x1)
    jax.block_until_ready(s1)

    # Case 2: larger batch, not a multiple of the tile -> exercises the
    # un-padded ragged last block and the >=2-step grid (v7x megacore path).
    x2 = jax.random.normal(kx2, (40, D_in), dtype=jnp.float32)
    s2 = forward(x2)
    jax.block_until_ready(s2)

    # Correctness vs. plain-JAX x @ W^T + b.  Tolerance covers the MXU's
    # default f32 path (multi-pass bf16) across generations; callers needing
    # strict f32 fidelity can trace under jax.default_matmul_precision("highest").
    for x, s in ((x1, s1), (x2, s2)):
        ref = x @ weight.T + bias
        assert s.shape == ref.shape
        assert jnp.allclose(s, ref, atol=2e-3, rtol=2e-3), float(jnp.abs(s - ref).max())

    print("KERNEL_OK")
</pallas_src>

<mosaic_0001>
module attributes {stable_mosaic.version = 11 : i64} {
  func.func @_linear_kernel(%arg0: i32, %arg1: memref<8x32xf32, #tpu.memory_space<vmem>>, %arg2: memref<32x128xf32, #tpu.memory_space<vmem>>, %arg3: memref<1x128xf32, #tpu.memory_space<vmem>>, %arg4: memref<8x8xf32, #tpu.memory_space<vmem>>) attributes {dimension_semantics = [#tpu.dimension_semantics<parallel>], iteration_bounds = array<i64: 1>, scalar_prefetch = 0 : i64, scratch_operands = 0 : i64, tpu.core_type = #tpu.core_type<tc>, window_params = [{transform_indices = @transform_0, window_bounds = array<i64: 8, 32>}, {pipeline_mode = #tpu.pipeline_mode<synchronous>, transform_indices = @transform_1, window_bounds = array<i64: 32, 128>}, {pipeline_mode = #tpu.pipeline_mode<synchronous>, transform_indices = @transform_2, window_bounds = array<i64: 1, 128>}, {transform_indices = @transform_3, window_bounds = array<i64: 8, 8>}]} {
    %c0 = arith.constant 0 : index
    %c0_0 = arith.constant 0 : index
    %0 = vector.load %arg1[%c0, %c0_0] : memref<8x32xf32, #tpu.memory_space<vmem>>, vector<8x32xf32>
    %c0_1 = arith.constant 0 : index
    %c0_2 = arith.constant 0 : index
    %1 = vector.load %arg2[%c0_1, %c0_2] : memref<32x128xf32, #tpu.memory_space<vmem>>, vector<32x128xf32>
    %cst = arith.constant dense<0.000000e+00> : vector<8x128xf32>
    %2 = tpu.matmul %0, %1, %cst {dimension_numbers = #tpu.dot_dimension_numbers<[1], [0], [0], [1], [0, 0, 1, 1], [], []>} : vector<8x32xf32>, vector<32x128xf32>, vector<8x128xf32> -> vector<8x128xf32>
    %c0_3 = arith.constant 0 : index
    %c0_4 = arith.constant 0 : index
    %3 = vector.load %arg3[%c0_3, %c0_4] : memref<1x128xf32, #tpu.memory_space<vmem>>, vector<1x128xf32>
    %4 = vector.broadcast %3 : vector<1x128xf32> to vector<8x128xf32>
    %5 = arith.addf %2, %4 : vector<8x128xf32>
    %6 = vector.extract_strided_slice %5 {offsets = [0, 0], sizes = [8, 8], strides = [1, 1]} : vector<8x128xf32> to vector<8x8xf32>
    %c0_5 = arith.constant 0 : index
    %c0_6 = arith.constant 0 : index
    %7 = vector.load %arg4[%c0_5, %c0_6] : memref<8x8xf32, #tpu.memory_space<vmem>>, vector<8x8xf32>
    tpu.vector_store %arg4[%c0_5, %c0_6], %6 {strides = array<i32>} : memref<8x8xf32, #tpu.memory_space<vmem>>, vector<8x8xf32>,
    return
  }
  func.func @transform_0(%arg0: i32) -> (i32, i32) {
    %c0_i32 = arith.constant 0 : i32
    %c0_i32_0 = arith.constant 0 : i32
    return %arg0, %c0_i32 : i32, i32
  }
  func.func @transform_1(%arg0: i32) -> (i32, i32) {
    %c0_i32 = arith.constant 0 : i32
    %c0_i32_0 = arith.constant 0 : i32
    %c0_i32_1 = arith.constant 0 : i32
    return %c0_i32, %c0_i32_0 : i32, i32
  }
  func.func @transform_2(%arg0: i32) -> (i32, i32) {
    %c0_i32 = arith.constant 0 : i32
    %c0_i32_0 = arith.constant 0 : i32
    %c0_i32_1 = arith.constant 0 : i32
    return %c0_i32, %c0_i32_0 : i32, i32
  }
  func.func @transform_3(%arg0: i32) -> (i32, i32) {
    %c0_i32 = arith.constant 0 : i32
    %c0_i32_0 = arith.constant 0 : i32
    return %arg0, %c0_i32 : i32, i32
  }
}

</mosaic_0001>

<bundles_post_ra>
// kernel: forward.1
= control target key start
LH: loop header
LB: loop body
LE: loop exit
PB: predicated region body
PF: predicated region fallthrough
CT: control target
= control target key end

     0   :  { %8 = vsyncpa [#allocation3], 0  ;;  %s275_s0 = inlined_call_operand.hbm [shape: f32[8,32], index: 0, kind: input, shape index: {}]   ;;  %s276_s1 = inlined_call_operand.hbm [shape: f32[32,128], index: 1, kind: input, shape index: {}]   ;;  %s277_s2 = inlined_call_operand.vmem [shape: f32[1,128], index: 2, kind: input, shape index: {}]   ;;  %s278_s3 = inlined_call_operand.hbm [shape: f32[8,8], index: 3, kind: output, shape index: {}]  }
   0x1   :  { %9 = vsyncpa [#allocation6], 0 }
   0x2   :  { %10 = vsyncpa [#allocation4], 0  ;;  %s236_s12 = smov [#allocation2]   ;;  %s237_s14 = smov [#allocation5]  }
   0x3   :  { %s17_s13 = sshll.u32 %s236_s12, 4  ;;  %s26_s15 = sshll.u32 %s237_s14, 4  ;;  %s18_s13 = int_to_ptr.vmem [resolvable:$true] %s17_s13  ;;  %s27_s15 = int_to_ptr.vmem [resolvable:$true] %s26_s15 }
   0x4   :  { %s178_s16 = scalar_lea.vmem %s18_s13, 128  ;;  %p183_p1 = scmp.lt.s32.totalorder %s18_s13, %s18_s13 }
   0x5   :  { %p179_p0 = scmp.ne.s32.totalorder %s18_s13, %s178_s16  ;;  %p184_p2 = scmp.lt.s32.totalorder %s178_s16, %s178_s16 }
   0x7   :  { %p185_p3 = por %p184_p2, %p183_p1 }
   0x9   :  { %p186_p4 = pnand %p185_p3, %p179_p0 }
   0xb   :  { %189 = shalt.err (!%p186_p4)
}
   0xc   :  { %20 = dma.hbm_to_vmem [thread:$0]  %s275_s0, 128, %s18_s13, [#allocation3]  }
   0xd   :  { %s198_s19 = scalar_lea.vmem %s27_s15, 512  ;;  %p203_p6 = scmp.lt.s32.totalorder %s27_s15, %s27_s15 }
   0xe   :  { %p199_p5 = scmp.ne.s32.totalorder %s27_s15, %s198_s19  ;;  %p204_p7 = scmp.lt.s32.totalorder %s198_s19, %s198_s19 }
  0x10   :  { %p205_p8 = por %p204_p7, %p203_p6 }
  0x12   :  { %p206_p9 = pnand %p205_p8, %p199_p5 }
  0x14   :  { %209 = shalt.err (!%p206_p9)
}
  0x15   :  { %s238_s20 = smov 128   ;;  %s239_s21 = smov 8  }
  0x16   :  { %32 = dma.hbm_to_vmem [thread:$0]  %s276_s1, 512, %s27_s15, [#allocation6], %s238_s20, %s238_s20, %s239_s21  }
  0x17   :  { %230 = dma.done.wait [#allocation3], 128  }
  0x18   :  { %231 = vsyncadd [#allocation3], 4294967168 }
  0x19   :  { %232 = dma.done.wait [#allocation6], 512  }
  0x1a   :  { %233 = vsyncadd [#allocation6], 4294966784  ;;  %v240_v0 = vmov 0.0   ;;  %vm241_vm0 = vmmov 0   ;;  %v45_v1 = vld [vmem:[#allocation5 + $0x18] sm:$0xff]  ;;  %v44_v2 = vld [vmem:[#allocation5 + $0x10] sm:$0xff] }
  0x1b   :  { %152 = vmatprep.subr.mxu0 %v240_v0  ;;  %160 = vmatprep.mubr.msk.f32.mxu0 %vm241_vm0, %v240_v0  ;;  %v43_v3 = vld [vmem:[#allocation5 + $0x8] sm:$0xff]  ;;  %v42_v4 = vld [vmem:[#allocation5] sm:$0xff]  ;;  %v41_v5 = vld [vmem:[#allocation2] sm:$0xff]  ;;  %vm53_vm1 = vcmask 261120   ;;  %s242_s24 = smov [#allocation7]   ;;  %vm127_vm2 = vcmask 64512  }
  0x1c   :  { %153 = vmatpush3.msra.mxu0 %v45_v1  ;;  %v145_v6 = vld [vmem:[%s277_s2] ss:$0 sm:$0xff]  ;;  %s135_s25 = sshll.u32 %s242_s24, 4  ;;  %s136_s25 = int_to_ptr.vmem [resolvable:$true] %s135_s25 }
  0x1d   :  { %154 = vmatprep.subr.mxu0 %v240_v0  ;;  %s210_s26 = scalar_lea.vmem %s136_s25, 128  ;;  %p215_p11 = scmp.lt.s32.totalorder %s136_s25, %s136_s25 }
  0x1e   :  { %155 = vmatpush3.msra.mxu0 %v44_v2  ;;  %p211_p10 = scmp.ne.s32.totalorder %s136_s25, %s210_s26  ;;  %p216_p12 = scmp.lt.s32.totalorder %s210_s26, %s210_s26 }
  0x1f   :  { %156 = vmatprep.subr.mxu0 %v240_v0 }
  0x20   :  { %157 = vmatpush3.msra.mxu0 %v43_v3  ;;  %p217_p13 = por %p216_p12, %p215_p11 }
  0x21   :  { %158 = vmatprep.subr.mxu0 %v240_v0 }
  0x22   :  { %159 = vmatpush3.msra.mxu0 %v42_v4  ;;  %p218_p0 = pnand %p217_p13, %p211_p10 }
  0x23   :  { %161 = vmatmul.mubr.msk.f32.vlgmr.msra.gmra.mxu0 %vm53_vm1, %v41_v5 }
  0xe3   :  { %v123_v7 = vpop.f32.mrf.mxu0 }
  0xe4   :  { %v124_v8 = vadd.f32 %v145_v6, %v123_v7 }
  0xe5   :  { %v162_v9 = vpop.f32.mrf.mxu0 }
  0xe6   :  { %128 = vst.msk [vmem:[#allocation7] sm:$0xff] %vm127_vm2, %v124_v8 }
  0xe7   :  { %221 = shalt.err (!%p218_p0)
}
  0xe8   :  { %138 = dma.vmem_to_hbm [thread:$0]  %s136_s25, 128, %s278_s3, [#allocation4]  }
  0xe9   :  { %234 = dma.done.wait [#allocation4], 128  }
  0xea   :  { %235 = vsyncadd [#allocation4], 4294967168 }
  0xeb   :  { %142 = vsyncpa [#allocation3], 1 }
  0xec   :  { %143 = vsyncpa [#allocation6], 1 }
  0xed   :  { %144 = vsyncpa [#allocation4], 1 }

</bundles_post_ra>
